<compile_context>
chip_gen: v7x
topology: tpu7x:2x2x1
jax: 0.10.0
libtpu: 0.0.40
codegen_flags: <defaults>
</compile_context>

<pallas_src>
import jax
import jax.numpy as jnp
from jax.experimental import pallas as pl
from jax.experimental.pallas import tpu as pltpu


def _vmem_capacity_bytes():
    """Generation-aware VMEM capacity (falls back to the smallest, v7x)."""
    try:
        return int(pltpu.get_tpu_info().vmem_capacity_bytes)
    except Exception:
        return 64 * 1024 * 1024  # conservative: v7x per-TC physical VMEM


def _choose_tiles(bc, hw, itemsize, max_tile_bytes):
    """Pick (tile_r, tile_hw, num_hw_tiles) for the pooling kernel.

    Preferred: full-HW rows per block (contiguous DMA, no pad/mask, purely
    'parallel' grid).  Fallback: lane-dense HW chunks + 'arbitrary' reduction.
    """
    row_bytes = hw * itemsize
    # sublane rule: row-tile must be a multiple of 8 or equal the full dim
    if bc % 8 != 0:
        tile_r_full = bc
    else:
        tile_r_full = min(bc, max(8, (max_tile_bytes // max(row_bytes, 1)) // 8 * 8))
    if tile_r_full * row_bytes <= max_tile_bytes or hw <= 128:
        return tile_r_full, hw, 1
    # Fallback for very large HW: split HW into multiple-of-128 chunks.
    tile_r = bc if bc % 8 != 0 else 8
    tile_hw = max(128, (max_tile_bytes // max(tile_r * itemsize, 1)) // 128 * 128)
    tile_hw = min(tile_hw, ((hw + 127) // 128) * 128)
    return tile_r, tile_hw, pl.cdiv(hw, tile_hw)


def _make_pool_kernel(hw, tile_hw, num_hw_tiles):
    """Per-row mean over HW, streamed over num_hw_tiles chunks."""
    inv_hw = 1.0 / float(hw)
    needs_mask = (hw % tile_hw) != 0  # static: only mask when HW has a ragged tail

    def kernel(x_ref, out_ref, acc_ref):
        j = pl.program_id(1)

        @pl.when(j == 0)
        def _():
            acc_ref[...] = jnp.zeros_like(acc_ref)

        xt = x_ref[...].astype(jnp.float32)
        if needs_mask:
            # Mask out-of-bounds tail lanes of the last HW chunk (replaces jnp.pad;
            # applied before the sum so garbage lanes never pollute the result).
            lane = jax.lax.broadcasted_iota(jnp.int32, xt.shape, 1)
            xt = jnp.where(lane + j * tile_hw < hw, xt, 0.0)
        acc_ref[...] += jnp.sum(xt, axis=-1, keepdims=True)

        @pl.when(j == num_hw_tiles - 1)
        def _():
            out_ref[...] = acc_ref[...] * inv_hw

    return kernel


def _gate_epilogue_kernel(pooled_ref, w1t_ref, b1_ref, gamma_ref, beta_ref,
                          w2t_ref, b2_ref, out_ref):
    """Tiny single-block epilogue: FC -> BN(train stats) -> ReLU -> FC."""
    pooled = pooled_ref[...]
    # gate_c_fc_0 : Linear(C -> C//r)
    h = jnp.dot(pooled, w1t_ref[...], preferred_element_type=jnp.float32) + b1_ref[...]
    # gate_c_bn_1 : BatchNorm1d, training-mode batch statistics (biased var)
    mu = jnp.mean(h, axis=0, keepdims=True)
    var = jnp.mean((h - mu) ** 2, axis=0, keepdims=True)
    h = (h - mu) * jax.lax.rsqrt(var + 1e-5) * gamma_ref[...] + beta_ref[...]
    # gate_c_relu_1
    h = jnp.maximum(h, 0.0)
    # gate_c_fc_final : Linear(C//r -> C)
    g = jnp.dot(h, w2t_ref[...], preferred_element_type=jnp.float32) + b2_ref[...]
    out_ref[...] = g.astype(out_ref.dtype)


def channel_gate(x, params, max_tile_bytes=None):
    """x: (B, C, H, W). Returns (B, C, H, W) gate values (broadcast over space)."""
    B, C, H, W = x.shape
    assert H == W, "module's Flatten implies square spatial pooling"
    HW = H * W
    BC = B * C
    itemsize = x.dtype.itemsize

    vmem_cap = _vmem_capacity_bytes()
    if max_tile_bytes is None:
        # Keep the double-buffered x tile well under the scoped VMEM budget on
        # every generation (v7x: 64 MiB physical; v5e/v6e: 128 MiB physical).
        max_tile_bytes = int(min(max(vmem_cap // 8, 1 << 20), 16 * 1024 * 1024))

    tile_r, tile_hw, n_hw = _choose_tiles(BC, HW, itemsize, max_tile_bytes)
    n_r = pl.cdiv(BC, tile_r)

    x_rows = x.reshape(BC, HW)  # contiguous rows; no padding copy in HBM

    x_tile_bytes = tile_r * tile_hw * itemsize
    vmem_limit = int(min(2 * x_tile_bytes + (4 << 20), max(vmem_cap // 2, 8 << 20)))
    vmem_limit = max(vmem_limit, 8 << 20)

    pool_kernel = _make_pool_kernel(HW, tile_hw, n_hw)

    pooled = pl.pallas_call(
        pool_kernel,
        out_shape=jax.ShapeDtypeStruct((BC, 1), jnp.float32),
        grid_spec=pltpu.PrefetchScalarGridSpec(
            num_scalar_prefetch=0,
            grid=(n_r, n_hw),
            in_specs=[pl.BlockSpec((tile_r, tile_hw), lambda i, j: (i, j))],
            out_specs=pl.BlockSpec((tile_r, 1), lambda i, j: (i, 0)),
            scratch_shapes=[pltpu.VMEM((tile_r, 1), jnp.float32)],
        ),
        compiler_params=pltpu.CompilerParams(
            # rows are independent -> 'parallel' (v7x megacore); HW reduction,
            # when split at all, stays on the sequential 'arbitrary' axis.
            dimension_semantics=("parallel", "arbitrary"),
            vmem_limit_bytes=vmem_limit,
        ),
    )(x_rows)

    pooled = pooled.reshape(B, C)

    # Microscopic epilogue as a second (single-block, grid-less) pallas_call.
    g = pl.pallas_call(
        _gate_epilogue_kernel,
        out_shape=jax.ShapeDtypeStruct((B, C), jnp.float32),
    )(pooled, params["w1t"], params["b1"], params["gamma"], params["beta"],
      params["w2t"], params["b2"])

    # unsqueeze(2).unsqueeze(3).expand_as(x) — kept outside the kernels; under
    # jit the broadcast fuses into the downstream consumer instead of being a
    # full-size HBM write inside the memory-bound kernel.
    return jnp.broadcast_to(g[:, :, None, None].astype(x.dtype), (B, C, H, W))


def init_params(key, gate_channel, reduction_ratio=16):
    """Deterministic synthetic parameters matching nn.Linear / nn.BatchNorm1d shapes."""
    c = gate_channel
    cr = gate_channel // reduction_ratio
    k1, k2, k3, k4, k5, k6 = jax.random.split(key, 6)
    w1 = jax.random.uniform(k1, (cr, c), jnp.float32, -1.0, 1.0) / jnp.sqrt(c)
    b1 = jax.random.uniform(k2, (cr,), jnp.float32, -1.0, 1.0) / jnp.sqrt(c)
    gamma = 1.0 + 0.1 * jax.random.normal(k3, (cr,), jnp.float32)
    beta = 0.1 * jax.random.normal(k4, (cr,), jnp.float32)
    w2 = jax.random.uniform(k5, (c, cr), jnp.float32, -1.0, 1.0) / jnp.sqrt(cr)
    b2 = jax.random.uniform(k6, (c,), jnp.float32, -1.0, 1.0) / jnp.sqrt(cr)
    return {
        "w1t": w1.T,                    # (c, cr)
        "b1": b1.reshape(1, cr),
        "gamma": gamma.reshape(1, cr),
        "beta": beta.reshape(1, cr),
        "w2t": w2.T,                    # (cr, c)
        "b2": b2.reshape(1, c),
    }


def channel_gate_reference(x, params):
    """Pure-JAX reference mirroring the PyTorch forward (training-mode BN)."""
    B, C, H, W = x.shape
    pooled = jnp.mean(x.reshape(B, C, H * W), axis=-1)
    h = pooled @ params["w1t"] + params["b1"]
    mu = jnp.mean(h, axis=0, keepdims=True)
    var = jnp.mean((h - mu) ** 2, axis=0, keepdims=True)
    h = (h - mu) * jax.lax.rsqrt(var + 1e-5) * params["gamma"] + params["beta"]
    h = jnp.maximum(h, 0.0)
    g = h @ params["w2t"] + params["b2"]
    return jnp.broadcast_to(g[:, :, None, None], x.shape)


if __name__ == "__main__":
    key = jax.random.PRNGKey(0)
    kx1, kx2, kp = jax.random.split(key, 3)

    # gate_channel=32, reduction_ratio=16 -> hidden=2
    B, C = 2, 32
    params = init_params(kp, gate_channel=C, reduction_ratio=16)

    # Test 1: 16x16 -> default path: full-HW blocks, single 'parallel' grid axis.
    x1 = jax.random.normal(kx1, (B, C, 16, 16), jnp.float32)
    out1 = jax.block_until_ready(channel_gate(x1, params))
    ref1 = channel_gate_reference(x1, params)
    assert out1.shape == x1.shape
    assert jnp.allclose(out1, ref1, atol=1e-5, rtol=1e-5), "mismatch vs reference (test 1)"

    # Test 2: force the HW-split reduction fallback (tile_hw=128, 2 steps, no tail mask).
    out2 = jax.block_until_ready(channel_gate(x1, params, max_tile_bytes=4096))
    assert jnp.allclose(out2, ref1, atol=1e-5, rtol=1e-5), "mismatch vs reference (test 2)"

    # Test 3: 12x12 (HW=144, not a multiple of 128) -> full-HW-block path, no pad needed.
    x2 = jax.random.normal(kx2, (B, C, 12, 12), jnp.float32)
    out3 = jax.block_until_ready(channel_gate(x2, params))
    ref2 = channel_gate_reference(x2, params)
    assert out3.shape == x2.shape
    assert jnp.allclose(out3, ref2, atol=1e-5, rtol=1e-5), "mismatch vs reference (test 3)"

    # Test 4: 12x12 with forced HW split -> exercises in-kernel tail-lane masking.
    out4 = jax.block_until_ready(channel_gate(x2, params, max_tile_bytes=2048))
    assert jnp.allclose(out4, ref2, atol=1e-5, rtol=1e-5), "mismatch vs reference (test 4)"

    # TODO(synk): inference-mode BatchNorm (running stats) would need extra
    # mean/var params; this implements the module's default training-mode stats.
    print("KERNEL_OK")
</pallas_src>

<mosaic_0001>
module attributes {stable_mosaic.version = 11 : i64} {
  func.func @kernel(%arg0: i32, %arg1: i32, %arg2: memref<64x256xf32, #tpu.memory_space<vmem>>, %arg3: memref<64x1xf32, #tpu.memory_space<vmem>>, %arg4: memref<64x1xf32, #tpu.memory_space<vmem>>) attributes {dimension_semantics = [#tpu.dimension_semantics<parallel>, #tpu.dimension_semantics<arbitrary>], iteration_bounds = array<i64: 1, 1>, scalar_prefetch = 0 : i64, scratch_operands = 1 : i64, tpu.core_type = #tpu.core_type<tc>, window_params = [{transform_indices = @transform_0, window_bounds = array<i64: 64, 256>}, {transform_indices = @transform_1, window_bounds = array<i64: 64, 1>}]} {
    %c0_i32 = arith.constant 0 : i32
    %0 = arith.cmpi eq, %arg1, %c0_i32 : i32
    %1 = arith.extui %0 : i1 to i32
    %c0_i32_0 = arith.constant 0 : i32
    %2 = arith.cmpi ne, %1, %c0_i32_0 : i32
    scf.if %2 {
      %cst_8 = arith.constant 0.000000e+00 : f32
      %12 = vector.broadcast %cst_8 : f32 to vector<64x1xf32>
      %c0_9 = arith.constant 0 : index
      %c0_10 = arith.constant 0 : index
      %13 = vector.load %arg4[%c0_9, %c0_10] : memref<64x1xf32, #tpu.memory_space<vmem>>, vector<64x1xf32>
      tpu.vector_store %arg4[%c0_9, %c0_10], %12 {strides = array<i32>} : memref<64x1xf32, #tpu.memory_space<vmem>>, vector<64x1xf32>,
    } else {
    }
    %c0 = arith.constant 0 : index
    %c0_1 = arith.constant 0 : index
    %3 = vector.load %arg2[%c0, %c0_1] : memref<64x256xf32, #tpu.memory_space<vmem>>, vector<64x256xf32>
    %c0_2 = arith.constant 0 : index
    %c0_3 = arith.constant 0 : index
    %4 = vector.load %arg4[%c0_2, %c0_3] : memref<64x1xf32, #tpu.memory_space<vmem>>, vector<64x1xf32>
    %cst = arith.constant dense<0.000000e+00> : vector<64xf32>
    %5 = vector.multi_reduction <add>, %3, %cst [1] : vector<64x256xf32> to vector<64xf32>
    %6 = vector.shape_cast %5 : vector<64xf32> to vector<64x1xf32>
    %7 = arith.addf %4, %6 : vector<64x1xf32>
    %c0_4 = arith.constant 0 : index
    %c0_5 = arith.constant 0 : index
    %8 = vector.load %arg4[%c0_4, %c0_5] : memref<64x1xf32, #tpu.memory_space<vmem>>, vector<64x1xf32>
    tpu.vector_store %arg4[%c0_4, %c0_5], %7 {strides = array<i32>} : memref<64x1xf32, #tpu.memory_space<vmem>>, vector<64x1xf32>,
    %c0_i32_6 = arith.constant 0 : i32
    %9 = arith.cmpi eq, %arg1, %c0_i32_6 : i32
    %10 = arith.extui %9 : i1 to i32
    %c0_i32_7 = arith.constant 0 : i32
    %11 = arith.cmpi ne, %10, %c0_i32_7 : i32
    scf.if %11 {
      %c0_8 = arith.constant 0 : index
      %c0_9 = arith.constant 0 : index
      %12 = vector.load %arg4[%c0_8, %c0_9] : memref<64x1xf32, #tpu.memory_space<vmem>>, vector<64x1xf32>
      %cst_10 = arith.constant 3.906250e-03 : f32
      %13 = vector.broadcast %cst_10 : f32 to vector<64x1xf32>
      %14 = arith.mulf %12, %13 : vector<64x1xf32>
      %c0_11 = arith.constant 0 : index
      %c0_12 = arith.constant 0 : index
      %15 = vector.load %arg3[%c0_11, %c0_12] : memref<64x1xf32, #tpu.memory_space<vmem>>, vector<64x1xf32>
      tpu.vector_store %arg3[%c0_11, %c0_12], %14 {strides = array<i32>} : memref<64x1xf32, #tpu.memory_space<vmem>>, vector<64x1xf32>,
    } else {
    }
    return
  }
  func.func @transform_0(%arg0: i32, %arg1: i32) -> (i32, i32) {
    %c0_i32 = arith.constant 0 : i32
    return %arg0, %arg1 : i32, i32
  }
  func.func @transform_1(%arg0: i32, %arg1: i32) -> (i32, i32) {
    %c0_i32 = arith.constant 0 : i32
    %c0_i32_0 = arith.constant 0 : i32
    return %arg0, %c0_i32 : i32, i32
  }
}

</mosaic_0001>

<bundles_post_ra>
// kernel: tpu_custom_call.1
= control target key start
LH: loop header
LB: loop body
LE: loop exit
PB: predicated region body
PF: predicated region fallthrough
CT: control target
= control target key end

     0   :  { %6 = vsyncpa [#allocation4], 0  ;;  %s160_s6 = smov [#allocation3]   ;;  %s234_s0 = inlined_call_operand.hbm [shape: f32[64,256], index: 0, kind: input, shape index: {}]   ;;  %s235_s1 = inlined_call_operand.vmem [shape: f32[64,1], index: 1, kind: output, shape index: {}]  }
   0x1   :  { %s12_s7 = sshll.u32 %s160_s6, 4  ;;  %s136_s10 = scalar_lea.hbm %s234_s0, 2048  ;;  %s13_s7 = int_to_ptr.vmem [resolvable:$true] %s12_s7 }
   0x2   :  { %p137_p0 = scmp.ne.s32.totalorder %s234_s0, %s136_s10  ;;  %p140_p1 = scmp.lt.u32.totalorder %s136_s10, %s234_s0 }
   0x4   :  { %p142_p2 = pnand %p140_p1, %p137_p0 }
   0x6   :  { %145 = shalt.err (!%p142_p2)
}
   0x7   :  { %s146_s15 = scalar_lea.vmem %s13_s7, 2048  ;;  %p151_p4 = scmp.lt.s32.totalorder %s13_s7, %s13_s7 }
   0x8   :  { %p147_p3 = scmp.ne.s32.totalorder %s13_s7, %s146_s15  ;;  %p152_p5 = scmp.lt.s32.totalorder %s146_s15, %s146_s15 }
   0xa   :  { %p153_p6 = por %p152_p5, %p151_p4 }
   0xc   :  { %p154_p7 = pnand %p153_p6, %p147_p3 }
   0xe   :  { %157 = shalt.err (!%p154_p7)
}
   0xf   :  { %s161_s16 = smov 256   ;;  %s162_s17 = smov 16  }
  0x10   :  { %18 = dma.hbm_to_vmem [thread:$0]  %s234_s0, 2048, %s13_s7, [#allocation4], %s161_s16, %s161_s16, %s162_s17  }
  0x11   :  { %158 = dma.done.wait [#allocation4], 2048  }
  0x12   :  { %159 = vsyncadd [#allocation4], 4294965248  ;;  %vm26_vm0 = vcmask 7168   ;;  %v163_v0 = vmov 0.0   ;;  %v39_v1 = vld [vmem:[#allocation3 + $0x20] sm:$0xff]  ;;  %v40_v2 = vld [vmem:[#allocation3 + $0x28] sm:$0xff] }
  0x13   :  { %29 = vst.msk [vmem:[#allocation2 + $0x10] sm:$0xff] %vm26_vm0, %v163_v0  ;;  %27 = vst.msk [vmem:[#allocation2] sm:$0xff] %vm26_vm0, %v163_v0  ;;  %v35_v3 = vld [vmem:[#allocation3] sm:$0xff]  ;;  %v65_v4 = vadd.f32 %v40_v2, %v39_v1  ;;  %v36_v5 = vld [vmem:[#allocation3 + $0x8] sm:$0xff] }
  0x14   :  { %28 = vst.msk [vmem:[#allocation2 + $0x8] sm:$0xff] %vm26_vm0, %v163_v0  ;;  %30 = vst.msk [vmem:[#allocation2 + $0x18] sm:$0xff] %vm26_vm0, %v163_v0  ;;  %v41_v6 = vld [vmem:[#allocation3 + $0x30] sm:$0xff]  ;;  %v42_v7 = vld [vmem:[#allocation3 + $0x38] sm:$0xff]  ;;  %v59_v8 = vadd.f32 %v36_v5, %v35_v3 }
  0x15   :  { %31 = vst.msk [vmem:[#allocation2 + $0x20] sm:$0xff] %vm26_vm0, %v163_v0  ;;  %32 = vst.msk [vmem:[#allocation2 + $0x28] sm:$0xff] %vm26_vm0, %v163_v0  ;;  %v37_v9 = vld [vmem:[#allocation3 + $0x10] sm:$0xff]  ;;  %v38_v10 = vld [vmem:[#allocation3 + $0x18] sm:$0xff]  ;;  %66 = vadd.xlane.f32.xlu1 %v65_v4  ;;  %v68_v11 = vadd.f32 %v42_v7, %v41_v6 }
  0x16   :  { %33 = vst.msk [vmem:[#allocation2 + $0x30] sm:$0xff] %vm26_vm0, %v163_v0  ;;  %34 = vst.msk [vmem:[#allocation2 + $0x38] sm:$0xff] %vm26_vm0, %v163_v0  ;;  %60 = vadd.xlane.f32.xlu0 %v59_v8  ;;  %v62_v12 = vadd.f32 %v38_v10, %v37_v9  ;;  %v45_v13 = vld [vmem:[#allocation3 + $0x50] sm:$0xff]  ;;  %v46_v14 = vld [vmem:[#allocation3 + $0x58] sm:$0xff] }
  0x17   :  { %v43_v15 = vld [vmem:[#allocation3 + $0x40] sm:$0xff]  ;;  %v44_v16 = vld [vmem:[#allocation3 + $0x48] sm:$0xff]  ;;  %v74_v17 = vadd.f32 %v46_v14, %v45_v13  ;;  %v49_v19 = vld [vmem:[#allocation3 + $0x70] sm:$0xff] }
  0x18   :  { %v71_v18 = vadd.f32 %v44_v16, %v43_v15  ;;  %v50_v20 = vld [vmem:[#allocation3 + $0x78] sm:$0xff]  ;;  %v47_v21 = vld [vmem:[#allocation3 + $0x60] sm:$0xff]  ;;  %v48_v22 = vld [vmem:[#allocation3 + $0x68] sm:$0xff] }
  0x19   :  { %69 = vadd.xlane.f32.xlu1 %v68_v11  ;;  %v80_v23 = vadd.f32 %v50_v20, %v49_v19  ;;  %v77_v24 = vadd.f32 %v48_v22, %v47_v21 }
  0x1a   :  { %63 = vadd.xlane.f32.xlu0 %v62_v12  ;;  %v53_v25 = vld [vmem:[#allocation2 + $0x10] sm:$0xff]  ;;  %v51_v26 = vld [vmem:[#allocation2] sm:$0xff] }
  0x1b   :  { %v54_v31 = vld [vmem:[#allocation2 + $0x18] sm:$0xff]  ;;  %v52_v32 = vld [vmem:[#allocation2 + $0x8] sm:$0xff] }
  0x1c   :  { %v56_v37 = vld [vmem:[#allocation2 + $0x28] sm:$0xff]  ;;  %v55_v38 = vld [vmem:[#allocation2 + $0x20] sm:$0xff] }
  0x1d   :  { %75 = vadd.xlane.f32.xlu1 %v74_v17  ;;  %v58_v44 = vld [vmem:[#allocation2 + $0x38] sm:$0xff]  ;;  %v57_v47 = vld [vmem:[#allocation2 + $0x30] sm:$0xff] }
  0x1e   :  { %72 = vadd.xlane.f32.xlu0 %v71_v18 }
  0x21   :  { %81 = vadd.xlane.f32.xlu1 %v80_v23 }
  0x22   :  { %78 = vadd.xlane.f32.xlu0 %v77_v24 }
  0xa2   :  { %v67_v27 = vpop.xlane.xlu1 %66 }
  0xa3   :  { %v85_v28 = vadd.f32 %v67_v27, %v53_v25  ;;  %v61_v29 = vpop.xlane.xlu0 %60 }
  0xa4   :  { %v83_v30 = vadd.f32 %v61_v29, %v51_v26 }
  0xa5   :  { %94 = vst.msk [vmem:[#allocation2 + $0x10] sm:$0xff] %vm26_vm0, %v85_v28 }
  0xa6   :  { %92 = vst.msk [vmem:[#allocation2] sm:$0xff] %vm26_vm0, %v83_v30  ;;  %v70_v33 = vpop.xlane.xlu1 %69 }
  0xa7   :  { %v86_v34 = vadd.f32 %v70_v33, %v54_v31  ;;  %v64_v35 = vpop.xlane.xlu0 %63 }
  0xa8   :  { %v84_v36 = vadd.f32 %v64_v35, %v52_v32 }
  0xa9   :  { %95 = vst.msk [vmem:[#allocation2 + $0x18] sm:$0xff] %vm26_vm0, %v86_v34 }
  0xaa   :  { %93 = vst.msk [vmem:[#allocation2 + $0x8] sm:$0xff] %vm26_vm0, %v84_v36  ;;  %v76_v39 = vpop.xlane.xlu1 %75 }
  0xab   :  { %v88_v40 = vadd.f32 %v76_v39, %v56_v37  ;;  %v73_v41 = vpop.xlane.xlu0 %72 }
  0xac   :  { %v105_v42 = vld [vmem:[#allocation2 + $0x10] sm:$0xff]  ;;  %v87_v43 = vadd.f32 %v73_v41, %v55_v38 }
  0xad   :  { %v113_v45 = vmul.f32 0.00390625, %v105_v42  ;;  %v103_v46 = vld [vmem:[#allocation2] sm:$0xff]  ;;  %97 = vst.msk [vmem:[#allocation2 + $0x28] sm:$0xff] %vm26_vm0, %v88_v40 }
  0xae   :  { %v111_v48 = vmul.f32 0.00390625, %v103_v46  ;;  %96 = vst.msk [vmem:[#allocation2 + $0x20] sm:$0xff] %vm26_vm0, %v87_v43  ;;  %v82_v49 = vpop.xlane.xlu1 %81 }
  0xaf   :  { %121 = vst.msk [vmem:[%s235_s1 + $0x10] sm:$0xff] %vm26_vm0, %v113_v45  ;;  %v90_v50 = vadd.f32 %v82_v49, %v58_v44  ;;  %v79_v51 = vpop.xlane.xlu0 %78 }
  0xb0   :  { %119 = vst.msk [vmem:[%s235_s1] sm:$0xff] %vm26_vm0, %v111_v48  ;;  %v106_v52 = vld [vmem:[#allocation2 + $0x18] sm:$0xff]  ;;  %v89_v53 = vadd.f32 %v79_v51, %v57_v47 }
  0xb1   :  { %v114_v54 = vmul.f32 0.00390625, %v106_v52  ;;  %v104_v55 = vld [vmem:[#allocation2 + $0x8] sm:$0xff]  ;;  %99 = vst.msk [vmem:[#allocation2 + $0x38] sm:$0xff] %vm26_vm0, %v90_v50 }
  0xb2   :  { %v112_v56 = vmul.f32 0.00390625, %v104_v55  ;;  %98 = vst.msk [vmem:[#allocation2 + $0x30] sm:$0xff] %vm26_vm0, %v89_v53 }
  0xb3   :  { %122 = vst.msk [vmem:[%s235_s1 + $0x18] sm:$0xff] %vm26_vm0, %v114_v54 }
  0xb4   :  { %120 = vst.msk [vmem:[%s235_s1 + $0x8] sm:$0xff] %vm26_vm0, %v112_v56  ;;  %v108_v57 = vld [vmem:[#allocation2 + $0x28] sm:$0xff] }
  0xb5   :  { %v116_v58 = vmul.f32 0.00390625, %v108_v57  ;;  %v107_v59 = vld [vmem:[#allocation2 + $0x20] sm:$0xff] }
  0xb6   :  { %v115_v60 = vmul.f32 0.00390625, %v107_v59 }
  0xb7   :  { %124 = vst.msk [vmem:[%s235_s1 + $0x28] sm:$0xff] %vm26_vm0, %v116_v58 }
  0xb8   :  { %123 = vst.msk [vmem:[%s235_s1 + $0x20] sm:$0xff] %vm26_vm0, %v115_v60  ;;  %v110_v61 = vld [vmem:[#allocation2 + $0x38] sm:$0xff] }
  0xb9   :  { %v118_v62 = vmul.f32 0.00390625, %v110_v61  ;;  %v109_v63 = vld [vmem:[#allocation2 + $0x30] sm:$0xff] }
  0xba   :  { %v117_v0 = vmul.f32 0.00390625, %v109_v63 }
  0xbb   :  { %126 = vst.msk [vmem:[%s235_s1 + $0x38] sm:$0xff] %vm26_vm0, %v118_v62 }
  0xbc   :  { %125 = vst.msk [vmem:[%s235_s1 + $0x30] sm:$0xff] %vm26_vm0, %v117_v0 }
  0xbd   :  { %131 = vsyncpa [#allocation4], 1 }

</bundles_post_ra>
